<compile_context>
chip_gen: v5e
topology: v5e:2x2
jax: 0.10.0
libtpu: 0.0.40
codegen_flags: <defaults>
</compile_context>

<pallas_src>
import functools

import jax
import jax.numpy as jnp
from jax import lax
from jax.experimental import pallas as pl
from jax.experimental.pallas import tpu as pltpu


def _cheb_layer_t(m, dis, u0, w_ref, b_ref, k):
    """Transposed ChebConv layer: returns W @ [U_0; ...; U_{K-1}] + bias, U_k = T_k^T.

    U @ S == ((U * dis) @ M) * dis  with S = diag(dis) M diag(dis), L_hat = -S^T, so
      U_1 = -(U_0 @ S);  U_k = -2*(U_{k-1} @ S) - U_{k-2}.
    w_ref = [W_0 | W_1 | ... | W_{K-1}] of shape (Cout, K*Cin): one deep projection matmul.
    """
    def prop(u):  # u: (C, N) f32
        return jnp.dot(u * dis, m, preferred_element_type=jnp.float32) * dis

    us = [u0]
    if k > 1:
        us.append(-prop(u0))
        for _ in range(2, k):
            us.append(-2.0 * prop(us[-1]) - us[-2])
    ucat = jnp.concatenate(us, axis=0)            # (K*C, N) -- sublane-aligned concat
    return jnp.dot(w_ref[...], ucat, preferred_element_type=jnp.float32) + b_ref[...]


def two_layer_cheb_kernel(m_ref, x_ref, dis_ref, w1_ref, b1_ref, w2_ref, b2_ref,
                          logp_ref, out_ref, *, k):
    # Raw 0/1 adjacency mask (self-loops removed in the wrapper), cast to f32 exactly
    # once; all four recurrence matmuls reuse this single copy.
    m = m_ref[0].astype(jnp.float32)              # (N, N)
    dis = dis_ref[0]                              # (1, N) lane-layout deg^{-1/2}
    u0 = x_ref[0]                                 # (Cin, N) = X^T

    # Layer 1 + ReLU.
    h = jnp.maximum(_cheb_layer_t(m, dis, u0, w1_ref, b1_ref, k), 0.0)   # (H, N)
    # TODO(synk): F.dropout(p=0.2, training=True) has no RNG-exact Pallas equivalent;
    #             inference semantics (identity) used here.

    # Layer 2.
    o = _cheb_layer_t(m, dis, h, w2_ref, b2_ref, k)                      # (Cout, N)

    # log_softmax over the class axis (axis 0 here) -- fully lane-dense.
    mx = jnp.max(o, axis=0, keepdims=True)
    lse = jnp.log(jnp.sum(jnp.exp(o - mx), axis=0, keepdims=True)) + mx

    out_ref[0] = o.astype(out_ref.dtype)                                 # dense (Cout, N) store
    logp_ref[0] = (o - lse).astype(logp_ref.dtype)


def two_layer_cheb(x, adj, w1t, b1, w2t, b2, *, k=3):
    """x: (B, N, Cin) f32; adj: (B, N, N) f32 (only the !=0 pattern is used).
    w1t: (K, Cin, H), b1: (1, H), w2t: (K, H, Cout), b2: (1, Cout).
    Returns (log_softmax(out), out), each (B, N, Cout)."""
    bsz, n, cin = x.shape
    hid = w1t.shape[-1]
    cout = w2t.shape[-1]

    # Binary, self-loop-free adjacency mask (bf16: halves the dominant DMA) and the
    # symmetric-normalization coefficients dis = deg^{-1/2}, shipped in the (1, N)
    # lane layout the kernel consumes.  Both fuse into one XLA pass over adj.
    eye = jnp.eye(n, dtype=bool)
    nz = jnp.logical_and(adj != 0, jnp.logical_not(eye)[None])           # (B, N, N) bool
    mask = nz.astype(jnp.bfloat16)
    deg = jnp.sum(nz.astype(jnp.float32), axis=2)                        # row sums (B, N)
    dis = jnp.where(deg > 0.0, lax.rsqrt(deg), 0.0)[:, None, :]          # (B, 1, N)

    # Node axis onto lanes: x as (B, Cin, N).
    xt = jnp.transpose(x, (0, 2, 1))

    # Fuse the K per-order projections: W = [W_0 | ... | W_{K-1}] with W_k = w_t[k]^T.
    w1g = jnp.transpose(w1t, (2, 0, 1)).reshape(hid, k * cin)            # (H, K*Cin)
    w2g = jnp.transpose(w2t, (2, 0, 1)).reshape(cout, k * hid)           # (Cout, K*H)
    b1c = jnp.reshape(b1, (hid, 1))
    b2c = jnp.reshape(b2, (cout, 1))

    flops_per_graph = (2 * (k - 1) * (cin + hid) * n * n                 # recurrence
                       + 2 * hid * (k * cin) * n + 2 * cout * (k * hid) * n)  # projections
    cost = pl.CostEstimate(
        flops=bsz * flops_per_graph,
        transcendentals=bsz * (cout * n + n),                            # exp / log in softmax
        bytes_accessed=bsz * (n * n * 2 + cin * n * 4 + n * 4 + 2 * cout * n * 4)
                       + (hid * k * cin + hid + cout * k * hid + cout) * 4,
    )

    kernel = functools.partial(two_layer_cheb_kernel, k=k)
    logp_t, out_t = pl.pallas_call(
        kernel,
        out_shape=(jax.ShapeDtypeStruct((bsz, cout, n), jnp.float32),
                   jax.ShapeDtypeStruct((bsz, cout, n), jnp.float32)),
        grid_spec=pltpu.PrefetchScalarGridSpec(
            num_scalar_prefetch=0,
            grid=(bsz,),
            in_specs=[
                pl.BlockSpec((1, n, n), lambda i: (i, 0, 0)),            # adjacency mask (bf16)
                pl.BlockSpec((1, cin, n), lambda i: (i, 0, 0)),          # x^T
                pl.BlockSpec((1, 1, n), lambda i: (i, 0, 0)),            # dis (lane layout)
                pl.BlockSpec((hid, k * cin), lambda i: (0, 0)),          # fused W1
                pl.BlockSpec((hid, 1), lambda i: (0, 0)),                # bias1 (column)
                pl.BlockSpec((cout, k * hid), lambda i: (0, 0)),         # fused W2
                pl.BlockSpec((cout, 1), lambda i: (0, 0)),               # bias2 (column)
            ],
            out_specs=[
                pl.BlockSpec((1, cout, n), lambda i: (i, 0, 0)),
                pl.BlockSpec((1, cout, n), lambda i: (i, 0, 0)),
            ],
        ),
        compiler_params=pltpu.CompilerParams(dimension_semantics=("parallel",)),
        cost_estimate=cost,
    )(mask, xt, dis, w1g, b1c, w2g, b2c)

    # Back to the module's (B, N, Cout) layout (tiny XLA transpose outside the kernel).
    logp = jnp.transpose(logp_t, (0, 2, 1))
    out = jnp.transpose(out_t, (0, 2, 1))
    return logp, out


def reference(x, adj, w1t, b1, w2t, b2, *, k=3):
    """Pure-JAX reference of the same math (dense equivalent of PyG ChebConv)."""
    def per_graph(a, xi):
        n = a.shape[0]
        b_adj = jnp.where((a != 0.0) & (~jnp.eye(n, dtype=bool)), 1.0, 0.0)
        deg = jnp.sum(b_adj, axis=1)
        dis = jnp.where(deg > 0.0, lax.rsqrt(deg), 0.0)
        l_hat = -(dis[:, None] * b_adj.T * dis[None, :])

        def cheb(h, wt, bias):
            t0 = h
            out = t0 @ wt[0]
            t1 = l_hat @ t0
            out = out + t1 @ wt[1]
            tm2, tm1 = t0, t1
            for _kk in range(2, k):
                tk = 2.0 * (l_hat @ tm1) - tm2
                out = out + tk @ wt[_kk]
                tm2, tm1 = tm1, tk
            return out + bias

        h = jax.nn.relu(cheb(xi, w1t, b1))
        o = cheb(h, w2t, b2)
        return jax.nn.log_softmax(o, axis=-1), o

    return jax.vmap(per_graph)(adj, x)


if __name__ == "__main__":
    B, N = 2, 128
    CIN, HID, COUT, K = 16, 32, 8, 3

    key = jax.random.PRNGKey(0)
    kx, ka, kw1, kb1, kw2, kb2 = jax.random.split(key, 6)

    x = jax.random.normal(kx, (B, N, CIN), dtype=jnp.float32)
    # Sparse-ish (possibly asymmetric) adjacency with real values; only the !=0 pattern matters.
    mask = (jax.random.uniform(ka, (B, N, N)) > 0.8).astype(jnp.float32)
    adj = mask * jax.random.normal(ka, (B, N, N), dtype=jnp.float32)

    # Deterministic synthetic parameters (ChebConv has K bias-free Linears + one bias per layer).
    w1t = jax.random.normal(kw1, (K, CIN, HID), dtype=jnp.float32) * (1.0 / jnp.sqrt(CIN))
    b1 = jax.random.normal(kb1, (1, HID), dtype=jnp.float32) * 0.1
    w2t = jax.random.normal(kw2, (K, HID, COUT), dtype=jnp.float32) * (1.0 / jnp.sqrt(HID))
    b2 = jax.random.normal(kb2, (1, COUT), dtype=jnp.float32) * 0.1

    logp, out = jax.jit(functools.partial(two_layer_cheb, k=K))(x, adj, w1t, b1, w2t, b2)
    jax.block_until_ready((logp, out))

    logp_ref, out_ref = reference(x, adj, w1t, b1, w2t, b2, k=K)
    assert jnp.allclose(out, out_ref, atol=2e-3, rtol=2e-3), "raw output mismatch"
    assert jnp.allclose(logp, logp_ref, atol=2e-3, rtol=2e-3), "log_softmax mismatch"

    print("KERNEL_OK")
</pallas_src>

<mosaic_0001>
module attributes {stable_mosaic.version = 11 : i64} {
  func.func @two_layer_cheb_kernel(%arg0: i32, %arg1: memref<1x128x128xbf16, #tpu.memory_space<vmem>>, %arg2: memref<1x16x128xf32, #tpu.memory_space<vmem>>, %arg3: memref<1x1x128xf32, #tpu.memory_space<vmem>>, %arg4: memref<32x48xf32, #tpu.memory_space<vmem>>, %arg5: memref<32x1xf32, #tpu.memory_space<vmem>>, %arg6: memref<8x96xf32, #tpu.memory_space<vmem>>, %arg7: memref<8x1xf32, #tpu.memory_space<vmem>>, %arg8: memref<1x8x128xf32, #tpu.memory_space<vmem>>, %arg9: memref<1x8x128xf32, #tpu.memory_space<vmem>>) attributes {dimension_semantics = [#tpu.dimension_semantics<parallel>], iteration_bounds = array<i64: 2>, scalar_prefetch = 0 : i64, scratch_operands = 0 : i64, tpu.core_type = #tpu.core_type<tc>, window_params = [{transform_indices = @transform_0, window_bounds = array<i64: 1, 128, 128>}, {transform_indices = @transform_1, window_bounds = array<i64: 1, 16, 128>}, {transform_indices = @transform_2, window_bounds = array<i64: 1, 1, 128>}, {pipeline_mode = #tpu.pipeline_mode<synchronous>, transform_indices = @transform_3, window_bounds = array<i64: 32, 48>}, {pipeline_mode = #tpu.pipeline_mode<synchronous>, transform_indices = @transform_4, window_bounds = array<i64: 32, 1>}, {pipeline_mode = #tpu.pipeline_mode<synchronous>, transform_indices = @transform_5, window_bounds = array<i64: 8, 96>}, {pipeline_mode = #tpu.pipeline_mode<synchronous>, transform_indices = @transform_6, window_bounds = array<i64: 8, 1>}, {transform_indices = @transform_7, window_bounds = array<i64: 1, 8, 128>}, {transform_indices = @transform_8, window_bounds = array<i64: 1, 8, 128>}]} {
    %c0 = arith.constant 0 : index
    %c0_0 = arith.constant 0 : index
    %c0_1 = arith.constant 0 : index
    %0 = vector.load %arg1[%c0, %c0_0, %c0_1] : memref<1x128x128xbf16, #tpu.memory_space<vmem>>, vector<1x128x128xbf16>
    %1 = vector.shape_cast %0 : vector<1x128x128xbf16> to vector<128x128xbf16>
    %2 = arith.extf %1 : vector<128x128xbf16> to vector<128x128xf32>
    %c0_2 = arith.constant 0 : index
    %c0_3 = arith.constant 0 : index
    %c0_4 = arith.constant 0 : index
    %3 = vector.load %arg3[%c0_2, %c0_3, %c0_4] : memref<1x1x128xf32, #tpu.memory_space<vmem>>, vector<1x1x128xf32>
    %4 = vector.shape_cast %3 : vector<1x1x128xf32> to vector<1x128xf32>
    %c0_5 = arith.constant 0 : index
    %c0_6 = arith.constant 0 : index
    %c0_7 = arith.constant 0 : index
    %5 = vector.load %arg2[%c0_5, %c0_6, %c0_7] : memref<1x16x128xf32, #tpu.memory_space<vmem>>, vector<1x16x128xf32>
    %6 = vector.shape_cast %5 : vector<1x16x128xf32> to vector<16x128xf32>
    %7 = vector.broadcast %4 : vector<1x128xf32> to vector<16x128xf32>
    %8 = arith.mulf %6, %7 : vector<16x128xf32>
    %cst = arith.constant dense<0.000000e+00> : vector<16x128xf32>
    %9 = tpu.matmul %8, %2, %cst {dimension_numbers = #tpu.dot_dimension_numbers<[1], [0], [0], [1], [0, 0, 1, 1], [], []>} : vector<16x128xf32>, vector<128x128xf32>, vector<16x128xf32> -> vector<16x128xf32>
    %10 = vector.broadcast %4 : vector<1x128xf32> to vector<16x128xf32>
    %11 = arith.mulf %9, %10 : vector<16x128xf32>
    %cst_8 = arith.constant 0.000000e+00 : f32
    %12 = vector.broadcast %cst_8 : f32 to vector<16x128xf32>
    %13 = arith.subf %12, %11 : vector<16x128xf32>
    %14 = vector.broadcast %4 : vector<1x128xf32> to vector<16x128xf32>
    %15 = arith.mulf %13, %14 : vector<16x128xf32>
    %cst_9 = arith.constant dense<0.000000e+00> : vector<16x128xf32>
    %16 = tpu.matmul %15, %2, %cst_9 {dimension_numbers = #tpu.dot_dimension_numbers<[1], [0], [0], [1], [0, 0, 1, 1], [], []>} : vector<16x128xf32>, vector<128x128xf32>, vector<16x128xf32> -> vector<16x128xf32>
    %17 = vector.broadcast %4 : vector<1x128xf32> to vector<16x128xf32>
    %18 = arith.mulf %16, %17 : vector<16x128xf32>
    %cst_10 = arith.constant -2.000000e+00 : f32
    %19 = vector.broadcast %cst_10 : f32 to vector<16x128xf32>
    %20 = arith.mulf %19, %18 : vector<16x128xf32>
    %21 = arith.subf %20, %6 : vector<16x128xf32>
    %22 = tpu.concatenate %6, %13, %21 in 0 : vector<16x128xf32>, vector<16x128xf32>, vector<16x128xf32> -> vector<48x128xf32>
    %c0_11 = arith.constant 0 : index
    %c0_12 = arith.constant 0 : index
    %23 = vector.load %arg4[%c0_11, %c0_12] : memref<32x48xf32, #tpu.memory_space<vmem>>, vector<32x48xf32>
    %cst_13 = arith.constant dense<0.000000e+00> : vector<32x128xf32>
    %24 = tpu.matmul %23, %22, %cst_13 {dimension_numbers = #tpu.dot_dimension_numbers<[1], [0], [0], [1], [0, 0, 1, 1], [], []>} : vector<32x48xf32>, vector<48x128xf32>, vector<32x128xf32> -> vector<32x128xf32>
    %c0_14 = arith.constant 0 : index
    %c0_15 = arith.constant 0 : index
    %25 = vector.load %arg5[%c0_14, %c0_15] : memref<32x1xf32, #tpu.memory_space<vmem>>, vector<32x1xf32>
    %26 = vector.broadcast %25 : vector<32x1xf32> to vector<32x128xf32>
    %27 = arith.addf %24, %26 : vector<32x128xf32>
    %cst_16 = arith.constant 0.000000e+00 : f32
    %28 = vector.broadcast %cst_16 : f32 to vector<32x128xf32>
    %29 = arith.maximumf %27, %28 : vector<32x128xf32>
    %30 = vector.broadcast %4 : vector<1x128xf32> to vector<32x128xf32>
    %31 = arith.mulf %29, %30 : vector<32x128xf32>
    %cst_17 = arith.constant dense<0.000000e+00> : vector<32x128xf32>
    %32 = tpu.matmul %31, %2, %cst_17 {dimension_numbers = #tpu.dot_dimension_numbers<[1], [0], [0], [1], [0, 0, 1, 1], [], []>} : vector<32x128xf32>, vector<128x128xf32>, vector<32x128xf32> -> vector<32x128xf32>
    %33 = vector.broadcast %4 : vector<1x128xf32> to vector<32x128xf32>
    %34 = arith.mulf %32, %33 : vector<32x128xf32>
    %cst_18 = arith.constant 0.000000e+00 : f32
    %35 = vector.broadcast %cst_18 : f32 to vector<32x128xf32>
    %36 = arith.subf %35, %34 : vector<32x128xf32>
    %37 = vector.broadcast %4 : vector<1x128xf32> to vector<32x128xf32>
    %38 = arith.mulf %36, %37 : vector<32x128xf32>
    %cst_19 = arith.constant dense<0.000000e+00> : vector<32x128xf32>
    %39 = tpu.matmul %38, %2, %cst_19 {dimension_numbers = #tpu.dot_dimension_numbers<[1], [0], [0], [1], [0, 0, 1, 1], [], []>} : vector<32x128xf32>, vector<128x128xf32>, vector<32x128xf32> -> vector<32x128xf32>
    %40 = vector.broadcast %4 : vector<1x128xf32> to vector<32x128xf32>
    %41 = arith.mulf %39, %40 : vector<32x128xf32>
    %cst_20 = arith.constant -2.000000e+00 : f32
    %42 = vector.broadcast %cst_20 : f32 to vector<32x128xf32>
    %43 = arith.mulf %42, %41 : vector<32x128xf32>
    %44 = arith.subf %43, %29 : vector<32x128xf32>
    %45 = tpu.concatenate %29, %36, %44 in 0 : vector<32x128xf32>, vector<32x128xf32>, vector<32x128xf32> -> vector<96x128xf32>
    %c0_21 = arith.constant 0 : index
    %c0_22 = arith.constant 0 : index
    %46 = vector.load %arg6[%c0_21, %c0_22] : memref<8x96xf32, #tpu.memory_space<vmem>>, vector<8x96xf32>
    %cst_23 = arith.constant dense<0.000000e+00> : vector<8x128xf32>
    %47 = tpu.matmul %46, %45, %cst_23 {dimension_numbers = #tpu.dot_dimension_numbers<[1], [0], [0], [1], [0, 0, 1, 1], [], []>} : vector<8x96xf32>, vector<96x128xf32>, vector<8x128xf32> -> vector<8x128xf32>
    %c0_24 = arith.constant 0 : index
    %c0_25 = arith.constant 0 : index
    %48 = vector.load %arg7[%c0_24, %c0_25] : memref<8x1xf32, #tpu.memory_space<vmem>>, vector<8x1xf32>
    %49 = vector.broadcast %48 : vector<8x1xf32> to vector<8x128xf32>
    %50 = arith.addf %47, %49 : vector<8x128xf32>
    %cst_26 = arith.constant dense<0xFF800000> : vector<128xf32>
    %51 = vector.multi_reduction <maximumf>, %50, %cst_26 [0] : vector<8x128xf32> to vector<128xf32>
    %52 = vector.shape_cast %51 : vector<128xf32> to vector<1x128xf32>
    %53 = vector.broadcast %52 : vector<1x128xf32> to vector<8x128xf32>
    %54 = arith.subf %50, %53 : vector<8x128xf32>
    %55 = math.exp %54 : vector<8x128xf32>
    %cst_27 = arith.constant dense<0.000000e+00> : vector<128xf32>
    %56 = vector.multi_reduction <add>, %55, %cst_27 [0] : vector<8x128xf32> to vector<128xf32>
    %57 = vector.shape_cast %56 : vector<128xf32> to vector<1x128xf32>
    %58 = math.log %57 : vector<1x128xf32>
    %59 = arith.addf %58, %52 : vector<1x128xf32>
    %c0_28 = arith.constant 0 : index
    %c0_29 = arith.constant 0 : index
    %c0_30 = arith.constant 0 : index
    %60 = vector.load %arg9[%c0_28, %c0_29, %c0_30] : memref<1x8x128xf32, #tpu.memory_space<vmem>>, vector<1x8x128xf32>
    %61 = vector.shape_cast %60 : vector<1x8x128xf32> to vector<8x128xf32>
    %62 = vector.shape_cast %50 : vector<8x128xf32> to vector<1x8x128xf32>
    tpu.vector_store %arg9[%c0_28, %c0_29, %c0_30], %62 {strides = array<i32>} : memref<1x8x128xf32, #tpu.memory_space<vmem>>, vector<1x8x128xf32>,
    %63 = vector.broadcast %59 : vector<1x128xf32> to vector<8x128xf32>
    %64 = arith.subf %50, %63 : vector<8x128xf32>
    %c0_31 = arith.constant 0 : index
    %c0_32 = arith.constant 0 : index
    %c0_33 = arith.constant 0 : index
    %65 = vector.load %arg8[%c0_31, %c0_32, %c0_33] : memref<1x8x128xf32, #tpu.memory_space<vmem>>, vector<1x8x128xf32>
    %66 = vector.shape_cast %65 : vector<1x8x128xf32> to vector<8x128xf32>
    %67 = vector.shape_cast %64 : vector<8x128xf32> to vector<1x8x128xf32>
    tpu.vector_store %arg8[%c0_31, %c0_32, %c0_33], %67 {strides = array<i32>} : memref<1x8x128xf32, #tpu.memory_space<vmem>>, vector<1x8x128xf32>,
    return
  }
  func.func @transform_0(%arg0: i32) -> (i32, i32, i32) {
    %c0_i32 = arith.constant 0 : i32
    %c0_i32_0 = arith.constant 0 : i32
    %c0_i32_1 = arith.constant 0 : i32
    return %arg0, %c0_i32, %c0_i32_0 : i32, i32, i32
  }
  func.func @transform_1(%arg0: i32) -> (i32, i32, i32) {
    %c0_i32 = arith.constant 0 : i32
    %c0_i32_0 = arith.constant 0 : i32
    %c0_i32_1 = arith.constant 0 : i32
    return %arg0, %c0_i32, %c0_i32_0 : i32, i32, i32
  }
  func.func @transform_2(%arg0: i32) -> (i32, i32, i32) {
    %c0_i32 = arith.constant 0 : i32
    %c0_i32_0 = arith.constant 0 : i32
    %c0_i32_1 = arith.constant 0 : i32
    return %arg0, %c0_i32, %c0_i32_0 : i32, i32, i32
  }
  func.func @transform_3(%arg0: i32) -> (i32, i32) {
    %c0_i32 = arith.constant 0 : i32
    %c0_i32_0 = arith.constant 0 : i32
    %c0_i32_1 = arith.constant 0 : i32
    return %c0_i32, %c0_i32_0 : i32, i32
  }
  func.func @transform_4(%arg0: i32) -> (i32, i32) {
    %c0_i32 = arith.constant 0 : i32
    %c0_i32_0 = arith.constant 0 : i32
    %c0_i32_1 = arith.constant 0 : i32
    return %c0_i32, %c0_i32_0 : i32, i32
  }
  func.func @transform_5(%arg0: i32) -> (i32, i32) {
    %c0_i32 = arith.constant 0 : i32
    %c0_i32_0 = arith.constant 0 : i32
    %c0_i32_1 = arith.constant 0 : i32
    return %c0_i32, %c0_i32_0 : i32, i32
  }
  func.func @transform_6(%arg0: i32) -> (i32, i32) {
    %c0_i32 = arith.constant 0 : i32
    %c0_i32_0 = arith.constant 0 : i32
    %c0_i32_1 = arith.constant 0 : i32
    return %c0_i32, %c0_i32_0 : i32, i32
  }
  func.func @transform_7(%arg0: i32) -> (i32, i32, i32) {
    %c0_i32 = arith.constant 0 : i32
    %c0_i32_0 = arith.constant 0 : i32
    %c0_i32_1 = arith.constant 0 : i32
    return %arg0, %c0_i32, %c0_i32_0 : i32, i32, i32
  }
  func.func @transform_8(%arg0: i32) -> (i32, i32, i32) {
    %c0_i32 = arith.constant 0 : i32
    %c0_i32_0 = arith.constant 0 : i32
    %c0_i32_1 = arith.constant 0 : i32
    return %arg0, %c0_i32, %c0_i32_0 : i32, i32, i32
  }
}

</mosaic_0001>

<bundles_post_ra>
// kernel: two_layer_cheb.1
= control target key start
LH: loop header
LB: loop body
LE: loop exit
PB: predicated region body
PF: predicated region fallthrough
CT: control target
= control target key end

     0   :  { %14 = vsyncpa [#allocation3], 0  ;;  %s1399_s0 = inlined_call_operand.vmem [shape: bf16[2,128,128], index: 0, kind: input, shape index: {}]   ;;  %s1400_s1 = inlined_call_operand.vmem [shape: f32[2,16,128], index: 1, kind: input, shape index: {}]   ;;  %s1401_s2 = inlined_call_operand.vmem [shape: f32[2,1,128], index: 2, kind: input, shape index: {}]   ;;  %s1402_s3 = inlined_call_operand.vmem [shape: f32[32,48], index: 3, kind: input, shape index: {}]   ;;  %s1403_s4 = inlined_call_operand.vmem [shape: f32[32,1], index: 4, kind: input, shape index: {}]   ;;  %s1404_s5 = inlined_call_operand.vmem [shape: f32[8,96], index: 5, kind: input, shape index: {}]   ;;  %s1405_s6 = inlined_call_operand.vmem [shape: f32[8,1], index: 6, kind: input, shape index: {}]   ;;  %s1406_s7 = inlined_call_operand.hbm [shape: f32[2,8,128], index: 7, kind: output, shape index: {0}]   ;;  %s1407_s8 = inlined_call_operand.hbm [shape: f32[2,8,128], index: 8, kind: output, shape index: {1}]  }
   0x1   :  { %16 = vsyncpa [#allocation3 + $0x1], 0 }
   0x2   :  { %17 = vsyncpa [#allocation5], 0 }
   0x3   :  { %19 = vsyncpa [#allocation5 + $0x1], 0  ;;  %s1080_s27 = smov 0   ;;  %s1082_s28 = smov 0  }
   0x4   :  { %s1084_s29 = smov 0   ;;  %s1086_s30 = smov 0  }
   0x5 LB: > { %s1101_s9 = sadd.s32 4294967295, %s1032_s30   ;;  %s807_s10 = sadd.s32 4294967294, %s1032_s30   ;;  %s1032_s30 = sphi %s1086_s30, %s1415_s30   ;;  %s1028_s29 = sphi %s1084_s29, %s1414_s29   ;;  %s1024_s28 = sphi %s1082_s28, %s1413_s28   ;;  %s1020_s27 = sphi %s1080_s27, %s1412_s27  }
   0x6   : > { %s1105_s11 = sadd.s32 1, %s1032_s30   ;;  %s194_s12 = sadd.s32 1, %s1028_s29 }
   0x7   : > { %s191_s13 = ssub.s32 %s1032_s30, %s1105_s11  ;;  %p204_p0 = scmp.ne.s32.totalorder %s1028_s29, %s1024_s28 }
   0x8   : > { %p192_p1 = scmp.eq.s32.totalorder %s191_s13, 0  ;;  %p205_p2 = scmp.eq.s32.totalorder %s1101_s9, 1 }
   0x9   : > { %p210_p3 = scmp.ne.s32.totalorder %s1024_s28, %s1020_s27  ;;  %p211_p4 = scmp.eq.s32.totalorder %s807_s10, 1 }
   0xa   : > { %s1116_s14 = scalar_select %p192_p1, %s1028_s29, %s194_s12  }
   0xb   : > { %p1118_p5 = por %p205_p2, %p204_p0  ;;  %p1122_p6 = por %p211_p4, %p210_p3 }
   0xc   : > { %p810_p7 = scmp.ge.s32.totalorder %s1032_s30, 1  ;;  %p289_p8 = scmp.lt.s32.totalorder %s1032_s30, 3 }
   0xe   : > { %p290_p9 = pnand %p810_p7, %p289_p8 }
   0xf   : > { %p336_p10 = scmp.lt.s32.totalorder (!%p290_p9), %s1101_s9, 1  ;;  %s824_s26 = sshll.u32 (!%p290_p9), %s1101_s9, 3 }
  0x10   : > { %293 = sbr.rel (%p290_p9) target bundleno = 982 (0x3d6), region = 48  ;;  %s958_s13 = scalar_lea.hbm (!%p290_p9), %s1407_s8, 16 }
  0x15   : > { %s1130_s17 = scalar_select %p336_p10, %s1101_s9, 1  ;;  %v1034_v37 = vmov 0   ;;  %v451_v39 = vld [vmem:[%s1403_s4] sm:$0xff]  ;;  %v452_v43 = vld [vmem:[%s1403_s4 + $0x8] sm:$0xff]  ;;  %v453_v48 = vld [vmem:[%s1403_s4 + $0x10] sm:$0xff]  ;;  %vm475_vm0 = vcmask 392192  }
  0x16   : > { %930 = vset.pattern.permute.xlu0 %v1034_v37  ;;  %931 = vset.pattern.permute.xlu1 %v1034_v37  ;;  %v447_v49 = vld [vmem:[%s1402_s3] sm:$0xff]  ;;  %v454_v50 = vld [vmem:[%s1403_s4 + $0x18] sm:$0xff]  ;;  %v448_v51 = vld [vmem:[%s1402_s3 + $0x8] sm:$0xff]  ;;  %vm614_vm1 = vcmask 785408  }
  0x17   : > { %s828_s18 = sshll.u32 %s1130_s17, 6  ;;  %s348_s21 = scalar_lea.vmem %s1401_s2, %s1130_s17  ;;  %932 = vset.pattern.permute.xlu2 %v1034_v37  ;;  %457 = vperm.xlu0 %930, %v451_v39   ;;  %v449_v52 = vld [vmem:[%s1402_s3 + $0x10] sm:$0xff]  ;;  %v450_v53 = vld [vmem:[%s1402_s3 + $0x18] sm:$0xff] }
  0x18   : > { %s1140_s24 = scalar_lea.vmem %s1399_s0, %s828_s18  ;;  %s829_s25 = sshll.u32 %s1130_s17, 4  ;;  %v1222_v22 = vld [vmem:[%s348_s21] ss:$0 sm:$0xff]  ;;  %467 = vperm.xlu1 %931, %v453_v48  }
  0x19   : > { %v868_v0 = vld [vmem:[%s1140_s24 + $0x38] sm:$0xff]   ;;  %v867_v1 = vld [vmem:[%s1140_s24 + $0x30] sm:$0xff]   ;;  %v866_v5 = vld [vmem:[%s1140_s24 + $0x28] sm:$0xff]   ;;  %s345_s12 = scalar_lea.vmem %s1400_s1, %s829_s25  ;;  %s1342_s25 = sand.u32 1, %s1024_s28  }
  0x1a   : > { %v1144_v2 = vunpack.c.h.bf16 %v868_v0  ;;  %v1146_v3 = vunpack.c.l.bf16 %v868_v0  ;;  %v1149_v4 = vunpack.c.h.bf16 %v867_v1  ;;  %v1155_v6 = vunpack.c.l.bf16 %v867_v1  ;;  %v865_v8 = vld [vmem:[%s1140_s24 + $0x20] sm:$0xff]   ;;  %v864_v11 = vld [vmem:[%s1140_s24 + $0x18] sm:$0xff]   ;;  %v863_v14 = vld [vmem:[%s1140_s24 + $0x10] sm:$0xff]   ;;  %s1408_s10 = sshll.u32 %s1342_s25, 3  ;;  %s689_s18 = scalar_lea.hbm %s1407_s8, %s824_s26 }
  0x1b   : > { %v1160_v7 = vunpack.c.h.bf16 %v866_v5  ;;  %v1166_v9 = vunpack.c.l.bf16 %v866_v5  ;;  %v1171_v10 = vunpack.c.h.bf16 %v865_v8  ;;  %v1177_v12 = vunpack.c.l.bf16 %v865_v8  ;;  %v862_v17 = vld [vmem:[%s1140_s24 + $0x8] sm:$0xff]   ;;  %v831_v20 = vld [vmem:[%s1140_s24] sm:$0xff]   ;;  %s335_s17 = scalar_lea.vmem [#allocation4], %s1408_s10  ;;  %s693_s20 = sshll.u32 %s689_s18, 4  ;;  %s694_s20 = int_to_ptr.hbm [resolvable:$true] %s693_s20 }
  0x1c   : > { %389 = vmatpush.msra.mxu0 %v1144_v2  ;;  %418 = vmatpush.msra.mxu1 %v1144_v2  ;;  %v1182_v13 = vunpack.c.h.bf16 %v864_v11  ;;  %v1188_v15 = vunpack.c.l.bf16 %v864_v11  ;;  %v1193_v16 = vunpack.c.h.bf16 %v863_v14  ;;  %v1199_v18 = vunpack.c.l.bf16 %v863_v14  ;;  %v1228_v24 = vld [vmem:[%s345_s12] sm:$0xff]  ;;  %v383_v27 = vld [vmem:[%s345_s12 + $0x8] sm:$0xff]  ;;  %s691_s19 = sshll.u32 %s335_s17, 4  ;;  %s665_s21 = scalar_lea.sflag [#allocation5], %s1342_s25  ;;  %s692_s19 = int_to_ptr.vmem [resolvable:$true] %s691_s19 }
  0x1d   : > { %525 = vmatpush.msra.mxu3 %v1144_v2  ;;  %v1205_v19 = vunpack.c.h.bf16 %v862_v17  ;;  %v1214_v21 = vunpack.c.l.bf16 %v862_v17  ;;  %v1226_v23 = vunpack.c.h.bf16 %v831_v20  ;;  %v1233_v25 = vunpack.c.l.bf16 %v831_v20  ;;  %s952_s22 = sshra.s32 %s694_s20, 4  ;;  %s953_s22 = int_to_ptr.hbm [resolvable:$true] %s952_s22 }
  0x1e   : > { %390 = vmatpush.msra.mxu0 %v1146_v3  ;;  %419 = vmatpush.msra.mxu1 %v1146_v3  ;;  %v387_v26 = vmul.f32 %v1222_v22, %v1228_v24  ;;  %v388_v28 = vmul.f32 %v1222_v22, %v383_v27  ;;  %s954_s23 = scalar_lea.hbm %s953_s22, 8  ;;  %p959_p0 = scmp.lt.s32.totalorder %s953_s22, %s1407_s8 }
  0x1f   : > { %526 = vmatpush.msra.mxu3 %v1146_v3  ;;  %462 = vperm.xlu0 %930, %v452_v43   ;;  %p955_p11 = scmp.ne.s32.totalorder %s953_s22, %s954_s23  ;;  %p960_p1 = scmp.lt.s32.totalorder %s958_s13, %s954_s23 }
  0x20   : > { %391 = vmatpush.msra.mxu0 %v1149_v4  ;;  %420 = vmatpush.msra.mxu1 %v1149_v4 }
  0x21   : > { %527 = vmatpush.msra.mxu3 %v1149_v4  ;;  %472 = vperm.xlu1 %931, %v454_v50   ;;  %p956_p12 = pnand %p955_p11, %p1118_p5  ;;  %p961_p2 = por %p960_p1, %p959_p0 }
  0x22   : > { %392 = vmatpush.msra.mxu0 %v1155_v6  ;;  %421 = vmatpush.msra.mxu1 %v1155_v6 }
  0x23   : > { %528 = vmatpush.msra.mxu3 %v1155_v6  ;;  %p957_p13 = pneg %p956_p12 }
  0x24   : > { %393 = vmatpush.msra.mxu0 %v1160_v7  ;;  %422 = vmatpush.msra.mxu1 %v1160_v7 }
  0x25   : > { %529 = vmatpush.msra.mxu3 %v1160_v7  ;;  %p962_p3 = pnand %p961_p2, %p957_p13 }
  0x26   : > { %394 = vmatpush.msra.mxu0 %v1166_v9  ;;  %423 = vmatpush.msra.mxu1 %v1166_v9 }
  0x27   : > { %530 = vmatpush.msra.mxu3 %v1166_v9 }
  0x28   : > { %395 = vmatpush.msra.mxu0 %v1171_v10  ;;  %424 = vmatpush.msra.mxu1 %v1171_v10 }
  0x29   : > { %531 = vmatpush.msra.mxu3 %v1171_v10 }
  0x2a   : > { %396 = vmatpush.msra.mxu0 %v1177_v12  ;;  %425 = vmatpush.msra.mxu1 %v1177_v12 }
  0x2b   : > { %532 = vmatpush.msra.mxu3 %v1177_v12 }
  0x2c   : > { %397 = vmatpush.msra.mxu0 %v1182_v13  ;;  %426 = vmatpush.msra.mxu1 %v1182_v13 }
  0x2d   : > { %533 = vmatpush.msra.mxu3 %v1182_v13 }
  0x2e   : > { %398 = vmatpush.msra.mxu0 %v1188_v15  ;;  %427 = vmatpush.msra.mxu1 %v1188_v15 }
  0x2f   : > { %534 = vmatpush.msra.mxu3 %v1188_v15 }
  0x30   : > { %399 = vmatpush.msra.mxu0 %v1193_v16  ;;  %428 = vmatpush.msra.mxu1 %v1193_v16 }
  0x31   : > { %535 = vmatpush.msra.mxu3 %v1193_v16 }
  0x32   : > { %400 = vmatpush.msra.mxu0 %v1199_v18  ;;  %429 = vmatpush.msra.mxu1 %v1199_v18 }
  0x33   : > { %536 = vmatpush.msra.mxu3 %v1199_v18 }
  0x34   : > { %401 = vmatpush.msra.mxu0 %v1205_v19  ;;  %430 = vmatpush.msra.mxu1 %v1205_v19 }
  0x35   : > { %537 = vmatpush.msra.mxu3 %v1205_v19 }
  0x36   : > { %402 = vmatpush.msra.mxu0 %v1214_v21  ;;  %431 = vmatpush.msra.mxu1 %v1214_v21 }
  0x37   : > { %538 = vmatpush.msra.mxu3 %v1214_v21 }
  0x38   : > { %403 = vmatpush.msra.mxu0 %v1226_v23  ;;  %432 = vmatpush.msra.mxu1 %v1226_v23 }
  0x39   : > { %539 = vmatpush.msra.mxu3 %v1226_v23 }
  0x3a   : > { %404 = vmatpush.msra.mxu0 %v1233_v25  ;;  %433 = vmatpush.msra.mxu1 %v1233_v25 }
  0x3b   : > { %405 = vmatmul.f32.vlgmr.msra.gmra.mxu0 %v387_v26  ;;  %540 = vmatpush.msra.mxu3 %v1233_v25 }
  0x3c   : > { %566 = vmatpush.msrb.mxu1 %v1144_v2 }
  0x3e   : > { %567 = vmatpush.msrb.mxu1 %v1146_v3 }
  0x40   : > { %568 = vmatpush.msrb.mxu1 %v1149_v4 }
  0x42   : > { %569 = vmatpush.msrb.mxu1 %v1155_v6 }
  0x43   : > { %408 = vmatmul.f32.gmra.mxu0 %v388_v28 }
  0x44   : > { %570 = vmatpush.msrb.mxu1 %v1160_v7 }
  0x46   : > { %571 = vmatpush.msrb.mxu1 %v1166_v9 }
  0x48   : > { %572 = vmatpush.msrb.mxu1 %v1171_v10 }
  0x4a   : > { %573 = vmatpush.msrb.mxu1 %v1177_v12 }
  0x4c   : > { %574 = vmatpush.msrb.mxu1 %v1182_v13 }
  0x4e   : > { %575 = vmatpush.msrb.mxu1 %v1188_v15 }
  0x50   : > { %576 = vmatpush.msrb.mxu1 %v1193_v16 }
  0x52   : > { %577 = vmatpush.msrb.mxu1 %v1199_v18 }
  0x54   : > { %578 = vmatpush.msrb.mxu1 %v1205_v19 }
  0x56   : > { %579 = vmatpush.msrb.mxu1 %v1214_v21 }
  0x58   : > { %580 = vmatpush.msrb.mxu1 %v1226_v23 }
  0x5a   : > { %581 = vmatpush.msrb.mxu1 %v1233_v25 }
  0x89   : > { %v458_v54 = vpop.permute.xlu0 %457 }
  0x8a   : > { %v468_v0 = vpop.permute.xlu1 %467 }
  0x91   : > { %v463_v59 = vpop.permute.xlu0 %462 }
  0x93   : > { %v473_v5 = vpop.permute.xlu1 %472 }
  0xb8   : > { %v406_v29 = vpop.f32.mrf.mxu0 }
  0xb9   : > { %v412_v30 = vmul.f32 %v1222_v22, %v406_v29  ;;  %v608_v29 = vld [vmem:[%s1405_s6] sm:$0xff] }
  0xba   : > { %611 = vperm.xlu2 %932, %v608_v29  }
  0xbb   : > { %v414_v31 = vsub.f32 0.0, %v412_v30 }
  0xbd   : > { %v416_v32 = vmul.f32 %v1222_v22, %v414_v31 }
  0xbf   : > { %434 = vmatmul.f32.vlgmr.msra.gmra.mxu1 %v416_v32 }
  0xc0   : > { %v409_v33 = vpop.f32.mrf.mxu0 }
  0xc1   : > { %v413_v34 = vmul.f32 %v1222_v22, %v409_v33 }
  0xc3   : > { %v415_v35 = vsub.f32 0.0, %v413_v34 }
  0xc5   : > { %v417_v36 = vmul.f32 %v1222_v22, %v415_v35 }
  0xc7   : > { %437 = vmatmul.f32.gmra.mxu1 %v417_v36 }
 0x13c   : > { %v435_v38 = vpop.f32.mrf.mxu1 }
 0x13d   : > { %v441_v40 = vmul.f32 %v1222_v22, %v435_v38 }
 0x13f   : > { %v443_v44 = vmul.f32 -2.0, %v441_v40 }
 0x141   : > { %v445_v47 = vsub.f32 %v443_v44, %v1228_v24  ;;  %v612_v44 = vpop.permute.xlu2 %611 }
 0x144   : > { %v438_v41 = vpop.f32.mrf.mxu1 }
 0x145   : > { %v442_v42 = vmul.f32 %v1222_v22, %v438_v41 }
 0x147   : > { %v444_v45 = vmul.f32 -2.0, %v442_v42 }
 0x149   : > { %v446_v46 = vsub.f32 %v444_v45, %v383_v27 }
 0x14b   : > { %498 = vmatpush.msra.mxu2 %v446_v46 }
 0x14d   : > { %499 = vmatpush.msra.mxu2 %v445_v47 }
 0x14f   : > { %500 = vmatpush.msra.mxu2 %v415_v35 }
 0x151   : > { %501 = vmatpush.msra.mxu2 %v414_v31 }
 0x153   : > { %502 = vmatpush.msra.mxu2 %v383_v27 }
 0x155   : > { %503 = vmatpush.msra.mxu2 %v1228_v24 }
 0x156   : > { %817 = vmatmul.msk.f32.vlgmr.msra.gmra.mxu2 %vm475_vm0, %v447_v49 }
 0x157   : > { %869 = vmatpush.msrb.mxu2 %v1144_v2 }
 0x159   : > { %870 = vmatpush.msrb.mxu2 %v1146_v3 }
 0x15b   : > { %871 = vmatpush.msrb.mxu2 %v1149_v4 }
 0x15d   : > { %872 = vmatpush.msrb.mxu2 %v1155_v6 }
 0x15e   : > { %818 = vmatmul.msk.f32.gmra.mxu2 %vm475_vm0, %v448_v51 }
 0x15f   : > { %873 = vmatpush.msrb.mxu2 %v1160_v7 }
 0x161   : > { %874 = vmatpush.msrb.mxu2 %v1166_v9 }
 0x163   : > { %875 = vmatpush.msrb.mxu2 %v1171_v10 }
 0x165   : > { %876 = vmatpush.msrb.mxu2 %v1177_v12 }
 0x166   : > { %819 = vmatmul.msk.f32.gmra.mxu2 %vm475_vm0, %v449_v52 }
 0x167   : > { %877 = vmatpush.msrb.mxu2 %v1182_v13 }
 0x169   : > { %878 = vmatpush.msrb.mxu2 %v1188_v15 }
 0x16b   : > { %879 = vmatpush.msrb.mxu2 %v1193_v16 }
 0x16d   : > { %880 = vmatpush.msrb.mxu2 %v1199_v18 }
 0x16e   : > { %820 = vmatmul.msk.f32.gmra.mxu2 %vm475_vm0, %v450_v53 }
 0x16f   : > { %881 = vmatpush.msrb.mxu2 %v1205_v19 }
 0x171   : > { %882 = vmatpush.msrb.mxu2 %v1214_v21 }
 0x173   : > { %883 = vmatpush.msrb.mxu2 %v1226_v23 }
 0x175   : > { %884 = vmatpush.msrb.mxu2 %v1233_v25 }
 0x1d9   : > { %v505_v55 = vpop.f32.mrf.mxu2 }
 0x1da   : > { %v506_v56 = vadd.f32 %v505_v55, %v458_v54 }
 0x1dc   : > { %v1314_v57 = vmax.f32 %v506_v56, 0.0 }
 0x1de   : > { %v521_v58 = vmul.f32 %v1222_v22, %v1314_v57 }
 0x1e0   : > { %541 = vmatmul.f32.vlgmr.msra.gmra.mxu3 %v521_v58 }
 0x1e1   : > { %v508_v60 = vpop.f32.mrf.mxu2 }
 0x1e2   : > { %v509_v61 = vadd.f32 %v508_v60, %v463_v59 }
 0x1e4   : > { %v518_v62 = vmax.f32 %v509_v61, 0.0 }
 0x1e6   : > { %v522_v63 = vmul.f32 %v1222_v22, %v518_v62 }
 0x1e8   : > { %544 = vmatmul.f32.gmra.mxu3 %v522_v63 }
 0x1e9   : > { %v511_v1 = vpop.f32.mrf.mxu2 }
 0x1ea   : > { %v512_v2 = vadd.f32 %v511_v1, %v468_v0 }
 0x1ec   : > { %v519_v3 = vmax.f32 %v512_v2, 0.0 }
 0x1ee   : > { %v523_v4 = vmul.f32 %v1222_v22, %v519_v3 }
 0x1f0   : > { %547 = vmatmul.f32.gmra.mxu3 %v523_v4 }
 0x1f1   : > { %v514_v6 = vpop.f32.mrf.mxu2 }
 0x1f2   : > { %v515_v7 = vadd.f32 %v514_v6, %v473_v5 }
 0x1f4   : > { %v520_v8 = vmax.f32 %v515_v7, 0.0 }
 0x1f6   : > { %v524_v9 = vmul.f32 %v1222_v22, %v520_v8 }
 0x1f8   : > { %550 = vmatmul.f32.gmra.mxu3 %v524_v9 }
 0x263   : > { %v542_v10 = vpop.f32.mrf.mxu3 }
 0x264   : > { %v554_v11 = vmul.f32 %v1222_v22, %v542_v10 }
 0x266   : > { %v558_v12 = vsub.f32 0.0, %v554_v11 }
 0x268   : > { %v562_v13 = vmul.f32 %v1222_v22, %v558_v12 }
 0x26a   : > { %582 = vmatmul.f32.vlgmr.msrb.gmra.mxu1 %v562_v13 }
 0x26b   : > { %v545_v14 = vpop.f32.mrf.mxu3 }
 0x26c   : > { %v555_v15 = vmul.f32 %v1222_v22, %v545_v14 }
 0x26e   : > { %v559_v16 = vsub.f32 0.0, %v555_v15 }
 0x270   : > { %v563_v17 = vmul.f32 %v1222_v22, %v559_v16 }
 0x272   : > { %585 = vmatmul.f32.vlgmr.msrb.gmra.mxu2 %v563_v17 }
 0x273   : > { %v548_v18 = vpop.f32.mrf.mxu3 }
 0x274   : > { %v556_v19 = vmul.f32 %v1222_v22, %v548_v18 }
 0x276   : > { %v560_v20 = vsub.f32 0.0, %v556_v19 }
 0x278   : > { %v564_v21 = vmul.f32 %v1222_v22, %v560_v20 }
 0x27a   : > { %588 = vmatmul.f32.gmra.mxu2 %v564_v21 }
 0x27b   : > { %v551_v23 = vpop.f32.mrf.mxu3 }
 0x27c   : > { %v557_v24 = vmul.f32 %v1222_v22, %v551_v23 }
 0x27e   : > { %v561_v25 = vsub.f32 0.0, %v557_v24 }
 0x280   : > { %v565_v26 = vmul.f32 %v1222_v22, %v561_v25 }
 0x282   : > { %591 = vmatmul.f32.gmra.mxu2 %v565_v26 }
 0x2e7   : > { %v583_v31 = vpop.f32.mrf.mxu1 }
 0x2e8   : > { %v595_v35 = vmul.f32 %v1222_v22, %v583_v31 }
 0x2ea   : > { %v599_v40 = vmul.f32 -2.0, %v595_v35 }
 0x2ec   : > { %v603_v43 = vsub.f32 %v599_v40, %v1314_v57 }
 0x2f5   : > { %v586_v27 = vpop.f32.mrf.mxu2 }
 0x2f6   : > { %v596_v33 = vmul.f32 %v1222_v22, %v586_v27 }
 0x2f8   : > { %v600_v38 = vmul.f32 -2.0, %v596_v33 }
 0x2fa   : > { %v604_v42 = vsub.f32 %v600_v38, %v518_v62 }
 0x2fd   : > { %v589_v28 = vpop.f32.mrf.mxu2 }
 0x2fe   : > { %v597_v30 = vmul.f32 %v1222_v22, %v589_v28 }
 0x300   : > { %v601_v36 = vmul.f32 -2.0, %v597_v30 }
 0x302   : > { %v605_v41 = vsub.f32 %v601_v36, %v519_v3 }
 0x305   : > { %v592_v32 = vpop.f32.mrf.mxu2 }
 0x306   : > { %v598_v34 = vmul.f32 %v1222_v22, %v592_v32  ;;  %v607_v22 = vld [vmem:[%s1404_s5] sm:$0xff] }
 0x308   : > { %v602_v37 = vmul.f32 -2.0, %v598_v34 }
 0x30a   : > { %v606_v39 = vsub.f32 %v602_v37, %v520_v8 }
 0x30c   : > { %622 = vmatpush.msrb.mxu0 %v606_v39 }
 0x30e   : > { %623 = vmatpush.msrb.mxu0 %v605_v41 }
 0x310   : > { %624 = vmatpush.msrb.mxu0 %v604_v42 }
 0x312   : > { %625 = vmatpush.msrb.mxu0 %v603_v43 }
 0x314   : > { %626 = vmatpush.msrb.mxu0 %v561_v25 }
 0x316   : > { %627 = vmatpush.msrb.mxu0 %v560_v20 }
 0x318   : > { %628 = vmatpush.msrb.mxu0 %v559_v16 }
 0x31a   : > { %629 = vmatpush.msrb.mxu0 %v558_v12 }
 0x31c   : > { %630 = vmatpush.msrb.mxu0 %v520_v8 }
 0x31e   : > { %631 = vmatpush.msrb.mxu0 %v519_v3 }
 0x320   : > { %632 = vmatpush.msrb.mxu0 %v518_v62 }
 0x322   : > { %633 = vmatpush.msrb.mxu0 %v1314_v57 }
 0x323   : > { %821 = vmatmul.msk.f32.vlgmr.msrb.gmra.mxu0 %vm614_vm1, %v607_v22 }
 0x3a0   : > { %v635_v45 = vpop.f32.mrf.mxu0 }
 0x3a1   : > { %v636_v46 = vadd.f32 %v635_v45, %v612_v44 }
 0x3a3   : > { %v638_v47 = vrot.slane %v636_v46, 4  ;;  %656 = vst [vmem:[%s335_s17] sm:$0xff] %v636_v46 }
 0x3a4   : > { %965 = shalt.err (!%p962_p3)
}
 0x3a5   : > { %886 = dma.vmem_to_hbm [thread:$0]  (%p1118_p5), %s692_s19, 128, %s694_s20, %s665_s21   ;;  %v639_v48 = vmax.f32 %v636_v46, %v638_v47 }
 0x3a6   : > { %s675_s19 = scalar_lea.hbm %s1406_s7, %s824_s26  ;;  %s1411_s20 = sshll.u32 %s1342_s25, 3 }
 0x3a7   : > { %v640_v49 = vrot.slane %v639_v48, 2  ;;  %s328_s21 = scalar_lea.vmem [#allocation2], %s1411_s20  ;;  %s679_s23 = sshll.u32 %s675_s19, 4  ;;  %s680_s23 = int_to_ptr.hbm [resolvable:$true] %s679_s23 }
 0x3a8   : > { %s677_s22 = sshll.u32 %s328_s21, 4  ;;  %s660_s24 = scalar_lea.sflag [#allocation3], %s1342_s25  ;;  %s678_s22 = int_to_ptr.vmem [resolvable:$true] %s677_s22 }
 0x3a9   : > { %v641_v50 = vmax.f32 %v639_v48, %v640_v49  ;;  %s980_s12 = sshra.s32 %s680_s23, 4  ;;  %s986_s18 = scalar_lea.hbm %s1406_s7, 16  ;;  %s981_s12 = int_to_ptr.hbm [resolvable:$true] %s980_s12 }
 0x3aa   : > { %s982_s9 = scalar_lea.hbm %s981_s12, 8  ;;  %p987_p9 = scmp.lt.s32.totalorder %s981_s12, %s1406_s7 }
 0x3ab   : > { %v642_v51 = vrot.slane %v641_v50, 1  ;;  %p983_p4 = scmp.ne.s32.totalorder %s981_s12, %s982_s9  ;;  %p988_p10 = scmp.lt.s32.totalorder %s986_s18, %s982_s9 }
 0x3ad   : > { %v643_v52 = vmax.f32 %v641_v50, %v642_v51  ;;  %p984_p7 = pnand %p983_p4, %p1118_p5  ;;  %p989_p11 = por %p988_p10, %p987_p9 }
 0x3af   : > { %v644_v53 = vsub.f32 %v636_v46, %v643_v52  ;;  %p985_p8 = pneg %p984_p7 }
 0x3b1   : > { %v645_v54 = vmul.f32 1.442695, %v644_v53  ;;  %p990_p12 = pnand %p989_p11, %p985_p8 }
 0x3b3   : > { %934 = vpow2.f32 %v645_v54 }
 0x3b9   : > { %v935_v55 = vpop.eup %934 }
 0x3ba   : > { %v647_v56 = vrot.slane %v935_v55, 4 }
 0x3bc   : > { %v648_v57 = vadd.f32 %v935_v55, %v647_v56 }
 0x3be   : > { %v649_v58 = vrot.slane %v648_v57, 2 }
 0x3c0   : > { %v650_v59 = vadd.f32 %v649_v58, %v648_v57 }
 0x3c2   : > { %v651_v60 = vrot.slane %v650_v59, 1 }
 0x3c4   : > { %v652_v61 = vadd.f32 %v651_v60, %v650_v59 }
 0x3c6   : > { %936 = vlog2.f32 %v652_v61 }
 0x3cc   : > { %v937_v62 = vpop.eup %936 }
 0x3cd   : > { %v654_v63 = vmul.f32 0.6931472, %v937_v62 }
 0x3cf   : > { %v655_v0 = vadd.f32 %v654_v63, %v643_v52 }
 0x3d1   : > { %v657_v1 = vsub.f32 %v636_v46, %v655_v0 }
 0x3d3   : > { %658 = vst [vmem:[%s328_s21] sm:$0xff] %v657_v1 }
 0x3d4   : > { %993 = shalt.err (!%p990_p12)
}
 0x3d5   : > { %885 = dma.vmem_to_hbm [thread:$0]  (%p1118_p5), %s678_s22, 128, %s680_s23, %s660_s24  }
 0x3d6 PF: > { %p896_p13 = scmp.ge.s32.totalorder %s1032_s30, 2  ;;  %s705_s25 = sand.u32 1, %s1020_s27  }
 0x3d7   : > { %s706_s19 = scalar_lea.sflag [#allocation3], %s705_s25 }
 0x3d8   : > { %p890_p0 = pnand %p896_p13, %p1122_p6 }
 0x3da   : > { %p891_p1 = pneg %p890_p0 }
 0x3dc   : > { %1011 = dma.done.wait (%p891_p1), %s706_s19, 128  }
 0x3dd   : > { %1013 = vsyncadd (%p891_p1), %s706_s19, 4294967168  ;;  %s716_s20 = scalar_lea.sflag [#allocation5], %s705_s25 }
 0x3de   : > { %1015 = dma.done.wait (%p891_p1), %s716_s20, 128  }
 0x3df   : > { %1017 = vsyncadd (%p891_p1), %s716_s20, 4294967168  ;;  %p22_p5 = scmp.ge.s32.totalorder %s1105_s11, 4   ;;  %s1412_s27 = smov %s1024_s28 }
 0x3e0   : > { %s1413_s28 = smov %s1028_s29  ;;  %s1414_s29 = smov %s1116_s14 }
 0x3e1   : > { %s1415_s30 = smov %s1105_s11  ;;  %24 = sbr.rel (!%p22_p5) target bundleno = 5 (0x5), region = 106 }
 0x3e6   :  { %722 = vsyncpa [#allocation3], 1 }
 0x3e7   :  { %724 = vsyncpa [#allocation3 + $0x1], 1 }
 0x3e8   :  { %725 = vsyncpa [#allocation5], 1 }
 0x3e9   :  { %727 = vsyncpa [#allocation5 + $0x1], 1 }

</bundles_post_ra>
